<compile_context>
chip_gen: v7x
topology: tpu7x:2x2x1
jax: 0.10.0
libtpu: 0.0.40
codegen_flags: <defaults>
</compile_context>

<pallas_src>
import jax
import jax.numpy as jnp
from jax.experimental import pallas as pl
from jax.experimental.pallas import tpu as pltpu


# ------------------------- Pallas kernel: tiled copy -------------------------
def _copy_kernel(x_ref, o_ref):
    # x_ref / o_ref: (tile_m, cols) lane-dense VMEM tiles.
    o_ref[...] = x_ref[...]


def _lane_dense_view(total):
    """Pick a cols width that is a big multiple of 128 (prefer no padding)."""
    for cols in (4096, 2048, 1024, 512, 256, 128):
        if total % cols == 0:
            return cols, 0
    cols = 128
    padded = pl.cdiv(total, cols) * cols
    return cols, padded - total


def flatten_pallas(x, start_dim=1, end_dim=-1):
    """Equivalent of the reference PyTorch Flatten.forward."""
    shape = tuple(x.shape)
    ndim = len(shape)
    ed = end_dim + ndim if end_dim < 0 else end_dim
    sd = start_dim + ndim if start_dim < 0 else start_dim
    first = shape[:sd]
    last = shape[ed + 1:]
    mid = 1
    for d in shape[sd:ed + 1]:
        mid *= d
    out_shape = first + (mid,) + last

    total = x.size
    if total == 0:
        # Nothing to copy; pure metadata reshape.
        return jnp.reshape(x, out_shape)

    itemsize = jnp.dtype(x.dtype).itemsize
    cols, pad = _lane_dense_view(total)

    flat = jnp.reshape(x, (-1,))          # contiguous reshape: free metadata op
    if pad:
        flat = jnp.pad(flat, (0, pad))    # rare fallback for odd element counts
    rows = (total + pad) // cols
    flat2d = jnp.reshape(flat, (rows, cols))

    # Row tile: as large as fits a ~4 MiB block (in + out double-buffered =>
    # <= 16 MiB VMEM, safe on v7x's smaller VMEM too).  Multiple of 8 sublanes
    # unless we take the whole extent.
    vmem_block_cap = 4 * 1024 * 1024
    max_rows = max(1, vmem_block_cap // (cols * itemsize))
    if rows <= max_rows:
        tile_m = rows                     # full extent: always a legal block
    else:
        tile_m = max(8, (max_rows // 8) * 8)

    grid_m = pl.cdiv(rows, tile_m)
    bytes_moved = 2 * rows * cols * itemsize

    out2d = pl.pallas_call(
        _copy_kernel,
        out_shape=jax.ShapeDtypeStruct((rows, cols), x.dtype),
        grid_spec=pltpu.PrefetchScalarGridSpec(
            num_scalar_prefetch=0,
            grid=(grid_m,),
            in_specs=[pl.BlockSpec((tile_m, cols), lambda i: (i, 0))],
            out_specs=pl.BlockSpec((tile_m, cols), lambda i: (i, 0)),
        ),
        compiler_params=pltpu.CompilerParams(
            dimension_semantics=("parallel",)),
        cost_estimate=pl.CostEstimate(
            flops=0, transcendentals=0, bytes_accessed=bytes_moved),
    )(flat2d)

    out_flat = jnp.reshape(out2d, (-1,))
    if pad:
        out_flat = out_flat[:total]
    return jnp.reshape(out_flat, out_shape)


class Flatten:
    """JAX/Pallas port of the reference PyTorch Flatten module."""

    def __init__(self, start_dim: int = 1, end_dim: int = -1):
        self.start_dim = start_dim
        self.end_dim = end_dim

    def __call__(self, x):
        return flatten_pallas(x, self.start_dim, self.end_dim)

    def extra_repr(self) -> str:
        return ", ".join(
            f"{key}={getattr(self, key)}" for key in ["start_dim", "end_dim"])


def _ref_flatten(x, start_dim, end_dim):
    """Pure-JAX reference mirroring the PyTorch forward exactly."""
    shape = tuple(x.shape)
    ndim = len(shape)
    ed = end_dim + ndim if end_dim < 0 else end_dim
    sd = start_dim + ndim if start_dim < 0 else start_dim
    first = shape[:sd]
    last = shape[ed + 1:]
    return jnp.reshape(x, first + (-1,) + last)


if __name__ == "__main__":
    key = jax.random.PRNGKey(0)

    # Primary case: NCHW activations, default Flatten(start_dim=1, end_dim=-1).
    x = jax.random.normal(key, (2, 4, 16, 16), dtype=jnp.float32)
    mod = Flatten()                       # start_dim=1, end_dim=-1
    out = jax.block_until_ready(mod(x))
    ref = _ref_flatten(x, 1, -1)
    assert out.shape == ref.shape == (2, 4 * 16 * 16)
    assert jnp.array_equal(out, ref), "default flatten mismatch"

    # Partial flatten in the middle of the tensor.
    mod2 = Flatten(start_dim=2, end_dim=3)
    out2 = jax.block_until_ready(mod2(x))
    ref2 = _ref_flatten(x, 2, 3)
    assert out2.shape == ref2.shape == (2, 4, 256)
    assert jnp.array_equal(out2, ref2), "partial flatten mismatch"

    # Negative dims + flatten-everything.
    mod3 = Flatten(start_dim=0, end_dim=-1)
    out3 = jax.block_until_ready(mod3(x))
    ref3 = _ref_flatten(x, 0, -1)
    assert out3.shape == ref3.shape == (2 * 4 * 16 * 16,)
    assert jnp.array_equal(out3, ref3), "full flatten mismatch"

    # Odd element count exercising the padded-copy fallback path.
    key2, _ = jax.random.split(key)
    y = jax.random.normal(key2, (3, 5, 7), dtype=jnp.float32)
    mod4 = Flatten(start_dim=1, end_dim=-1)
    out4 = jax.block_until_ready(mod4(y))
    ref4 = _ref_flatten(y, 1, -1)
    assert out4.shape == ref4.shape == (3, 35)
    assert jnp.array_equal(out4, ref4), "odd-shape flatten mismatch"

    print("KERNEL_OK")
</pallas_src>

<mosaic_0001>
module attributes {stable_mosaic.version = 11 : i64} {
  func.func @_copy_kernel(%arg0: i32, %arg1: memref<1x2048xf32, #tpu.memory_space<vmem>>, %arg2: memref<1x2048xf32, #tpu.memory_space<vmem>>) attributes {dimension_semantics = [#tpu.dimension_semantics<parallel>], iteration_bounds = array<i64: 1>, scalar_prefetch = 0 : i64, scratch_operands = 0 : i64, tpu.core_type = #tpu.core_type<tc>, window_params = [{transform_indices = @transform_0, window_bounds = array<i64: 1, 2048>}, {transform_indices = @transform_1, window_bounds = array<i64: 1, 2048>}]} {
    %c0 = arith.constant 0 : index
    %c0_0 = arith.constant 0 : index
    %0 = vector.load %arg1[%c0, %c0_0] : memref<1x2048xf32, #tpu.memory_space<vmem>>, vector<1x2048xf32>
    %c0_1 = arith.constant 0 : index
    %c0_2 = arith.constant 0 : index
    %1 = vector.load %arg2[%c0_1, %c0_2] : memref<1x2048xf32, #tpu.memory_space<vmem>>, vector<1x2048xf32>
    tpu.vector_store %arg2[%c0_1, %c0_2], %0 {strides = array<i32>} : memref<1x2048xf32, #tpu.memory_space<vmem>>, vector<1x2048xf32>,
    return
  }
  func.func @transform_0(%arg0: i32) -> (i32, i32) {
    %c0_i32 = arith.constant 0 : i32
    %c0_i32_0 = arith.constant 0 : i32
    return %arg0, %c0_i32 : i32, i32
  }
  func.func @transform_1(%arg0: i32) -> (i32, i32) {
    %c0_i32 = arith.constant 0 : i32
    %c0_i32_0 = arith.constant 0 : i32
    return %arg0, %c0_i32 : i32, i32
  }
}

</mosaic_0001>

<bundles_post_ra>
// kernel: tpu_custom_call.1
= control target key start
LH: loop header
LB: loop body
LE: loop exit
PB: predicated region body
PF: predicated region fallthrough
CT: control target
= control target key end

     0   :  { %6 = vsyncpa [#allocation3], 0  ;;  %s126_s0 = inlined_call_operand.hbm [shape: f32[1,2048], index: 0, kind: input, shape index: {}]   ;;  %s127_s1 = inlined_call_operand.hbm [shape: f32[1,2048], index: 1, kind: output, shape index: {}]  }
   0x1   :  { %7 = vsyncpa [#allocation4], 0  ;;  %s90_s6 = smov [#allocation2]   ;;  %s42_s10 = scalar_lea.hbm %s126_s0, 256 }
   0x2   :  { %s14_s7 = sshll.u32 %s90_s6, 4  ;;  %p43_p0 = scmp.ne.s32.totalorder %s126_s0, %s42_s10  ;;  %s15_s7 = int_to_ptr.vmem [resolvable:$true] %s14_s7 }
   0x3   :  { %p46_p1 = scmp.lt.u32.totalorder %s42_s10, %s126_s0 }
   0x5   :  { %p48_p2 = pnand %p46_p1, %p43_p0 }
   0x7   :  { %51 = shalt.err (!%p48_p2)
}
   0x8   :  { %s52_s15 = scalar_lea.vmem %s15_s7, 256  ;;  %p57_p4 = scmp.lt.s32.totalorder %s15_s7, %s15_s7 }
   0x9   :  { %p53_p3 = scmp.ne.s32.totalorder %s15_s7, %s52_s15  ;;  %p58_p5 = scmp.lt.s32.totalorder %s52_s15, %s52_s15 }
   0xb   :  { %p59_p6 = por %p58_p5, %p57_p4 }
   0xd   :  { %p60_p7 = pnand %p59_p6, %p53_p3 }
   0xf   :  { %63 = shalt.err (!%p60_p7)
}
  0x10   :  { %17 = dma.hbm_to_vmem [thread:$0]  %s126_s0, 256, %s15_s7, [#allocation3]  }
  0x11   :  { %86 = dma.done.wait [#allocation3], 256  }
  0x12   :  { %87 = vsyncadd [#allocation3], 4294967040  ;;  %s91_s18 = smov [#allocation5]   ;;  %v21_v0 = vld [vmem:[#allocation2] sm:$0xff]  ;;  %v22_v1 = vld [vmem:[#allocation2 + $0x8] sm:$0xff] }
  0x13   :  { %s31_s19 = sshll.u32 %s91_s18, 4  ;;  %23 = vst [vmem:[#allocation5] sm:$0xff] %v21_v0  ;;  %24 = vst [vmem:[#allocation5 + $0x8] sm:$0xff] %v22_v1  ;;  %s32_s19 = int_to_ptr.vmem [resolvable:$true] %s31_s19 }
  0x14   :  { %s64_s20 = scalar_lea.vmem %s32_s19, 256  ;;  %p69_p9 = scmp.lt.s32.totalorder %s32_s19, %s32_s19 }
  0x15   :  { %p65_p8 = scmp.ne.s32.totalorder %s32_s19, %s64_s20  ;;  %p70_p10 = scmp.lt.s32.totalorder %s64_s20, %s64_s20 }
  0x17   :  { %p71_p11 = por %p70_p10, %p69_p9 }
  0x19   :  { %p72_p12 = pnand %p71_p11, %p65_p8 }
  0x1b   :  { %75 = shalt.err (!%p72_p12)
}
  0x1c   :  { %s76_s0 = scalar_lea.hbm %s127_s1, 256 }
  0x1d   :  { %p77_p13 = scmp.ne.s32.totalorder %s127_s1, %s76_s0  ;;  %p80_p0 = scmp.lt.u32.totalorder %s76_s0, %s127_s1 }
  0x1f   :  { %p82_p1 = pnand %p80_p0, %p77_p13 }
  0x21   :  { %85 = shalt.err (!%p82_p1)
}
  0x22   :  { %34 = dma.vmem_to_hbm [thread:$0]  %s32_s19, 256, %s127_s1, [#allocation4]  }
  0x23   :  { %88 = dma.done.wait [#allocation4], 256  }
  0x24   :  { %89 = vsyncadd [#allocation4], 4294967040 }
  0x25   :  { %38 = vsyncpa [#allocation3], 1 }
  0x26   :  { %39 = vsyncpa [#allocation4], 1 }

</bundles_post_ra>
